<compile_context>
chip_gen: v5e
topology: v5e:2x2
jax: 0.10.0
libtpu: 0.0.40
codegen_flags: <defaults>
</compile_context>

<pallas_src>
import jax
import jax.numpy as jnp
import numpy as np
from jax.experimental import pallas as pl
from jax.experimental.pallas import tpu as pltpu


# --------------------------------------------------------------------------- kernel
def _linear_test_model_kernel(
    x_ref,      # (TB, 3, THW)  VMEM: batch tile, channels on sublanes, spatial on lanes
    w1_ref,     # (3, 3)        SMEM: conv1 weight, (Cin, Cout)
    b1_ref,     # (3,)          SMEM: conv1 bias
    w2_ref,     # (3,)          SMEM: conv2 weight with bn1 scale and 1/HW folded in
    tail_ref,   # (3,)          SMEM: [b2_eff, bn2_scale, bn2_shift]
    o_ref,      # (1, TB, 1)    output block
    acc_ref,    # (TB, 3)       VMEM scratch: pooled sums, resident across spatial axis
):
    hw_i = pl.program_id(1)

    @pl.when(hw_i == 0)
    def _init():
        acc_ref[...] = jnp.zeros_like(acc_ref)

    # Dense (TB, THW) channel planes; spatial dim on the 128-lane axis.
    x0 = x_ref[:, 0, :]
    x1 = x_ref[:, 1, :]
    x2 = x_ref[:, 2, :]

    # conv1 (1x1) + ReLU + partial spatial sum, unrolled over Cout=3.
    # (K=3 would waste >97% of the MXU; VPU FMAs are free under the HBM DMA.)
    for d in range(3):
        h = (x0 * w1_ref[0, d]
             + x1 * w1_ref[1, d]
             + x2 * w1_ref[2, d]
             + b1_ref[d])
        h = jnp.maximum(h, 0.0)
        acc_ref[:, d:d + 1] += jnp.sum(h, axis=-1, keepdims=True)

    @pl.when(hw_i == pl.num_programs(1) - 1)
    def _finalize():
        s = acc_ref[...]                                   # (TB, 3) pooled sums
        # conv2 (1x1, 3->1) with bn1 affine, 1/HW and conv2 bias folded in.
        z = (s[:, 0:1] * w2_ref[0]
             + s[:, 1:2] * w2_ref[1]
             + s[:, 2:3] * w2_ref[2]
             + tail_ref[0])                                # (TB, 1)
        z = jnp.maximum(z, 0.0) * tail_ref[1] + tail_ref[2]  # ReLU + bn2 (folded)
        o_ref[...] = z.reshape(o_ref.shape)                # (1, TB, 1)


# --------------------------------------------------------------------------- wrapper
def _choose_tiles(N, HW):
    """Pick (batch_tile, spatial_tile) so one f32 input block is ~2 MiB.

    Spatial tile is either the full H*W or a multiple of 128 that divides H*W,
    so the (8,128) block constraint holds and the pooled sum needs no masking.
    """
    target = (2 << 20) // 4                      # f32 elements per block
    tb = max(1, min(N, target // (3 * HW)))
    tb = min(tb, 128)
    if tb * 3 * HW <= target or HW % 128 != 0:
        thw = HW                                 # single spatial step
    else:
        thw = max(128, ((target // (tb * 3)) // 128) * 128)
        while HW % thw != 0:
            thw -= 128
    return tb, thw


def _fold_params(p, HW):
    """Fold BN (eval mode) + pooling constant into a minimal scalar param set."""
    eps = p["eps"]
    # conv1 weight (Cout, Cin, 1, 1) -> (Cin, Cout) so h_d = sum_c x_c * w1[c, d]
    w1 = jnp.transpose(p["conv1_w"].reshape(3, 3)).astype(jnp.float32)
    b1 = p["conv1_b"].astype(jnp.float32)

    s1 = p["bn1_gamma"] / jnp.sqrt(p["bn1_var"] + eps)
    t1 = p["bn1_beta"] - p["bn1_mean"] * s1

    w2 = p["conv2_w"].reshape(3)
    b2 = p["conv2_b"][0]
    s2 = p["bn2_gamma"][0] / jnp.sqrt(p["bn2_var"][0] + eps)
    t2 = p["bn2_beta"][0] - p["bn2_mean"][0] * s2

    # mean commutes with bn1's affine -> fold bn1, 1/HW and conv2 bias into conv2
    w2_eff = (s1 * w2 / HW).astype(jnp.float32)
    b2_eff = b2 + jnp.sum(t1 * w2)
    tail = jnp.stack([b2_eff, s2, t2]).astype(jnp.float32)
    return w1, b1, w2_eff, tail


def linear_test_model(x_nchw, params):
    """Forward pass. x_nchw: (N, 3, H, W) float32 -> (N, 1, 1, 1)."""
    N, C, H, W = x_nchw.shape
    assert C == 3
    HW = H * W

    # Free view of NCHW (no transpose): spatial dim lands on the 128-lane axis.
    x = x_nchw.reshape(N, C, HW)

    TB, THW = _choose_tiles(N, HW)
    NB = pl.cdiv(N, TB)
    N_pad = NB * TB
    if N_pad != N:
        x = jnp.pad(x, ((0, N_pad - N), (0, 0), (0, 0)))  # padded rows sliced off below
    NHW = HW // THW

    w1, b1, w2_eff, tail = _fold_params(params, HW)

    smem = pl.BlockSpec(memory_space=pltpu.MemorySpace.SMEM)
    out = pl.pallas_call(
        _linear_test_model_kernel,
        out_shape=jax.ShapeDtypeStruct((NB, TB, 1), jnp.float32),
        grid=(NB, NHW),
        in_specs=[
            pl.BlockSpec((TB, C, THW), lambda bi, hi: (bi, 0, hi)),
            smem, smem, smem, smem,
        ],
        out_specs=pl.BlockSpec((1, TB, 1), lambda bi, hi: (bi, 0, 0)),
        scratch_shapes=[pltpu.VMEM((TB, 3), jnp.float32)],
        compiler_params=pltpu.CompilerParams(
            dimension_semantics=("parallel", "arbitrary"),
            vmem_limit_bytes=32 * 1024 * 1024,
        ),
    )(x, w1, b1, w2_eff, tail)

    return out.reshape(N_pad)[:N].reshape(N, 1, 1, 1)


# --------------------------------------------------------------------------- params / reference
def make_params(key):
    """Deterministic synthetic parameters matching the PyTorch module shapes."""
    ks = jax.random.split(key, 10)
    n = lambda k, shape, s: s * jax.random.normal(k, shape, jnp.float32)
    return {
        "conv1_w": n(ks[0], (3, 3, 1, 1), 0.5),
        "conv1_b": n(ks[1], (3,), 0.1),
        "bn1_gamma": 1.0 + n(ks[2], (3,), 0.1),
        "bn1_beta": n(ks[3], (3,), 0.1),
        "bn1_mean": n(ks[4], (3,), 0.1),
        "bn1_var": jnp.abs(1.0 + n(ks[5], (3,), 0.1)),
        "conv2_w": n(ks[6], (1, 3, 1, 1), 0.5),
        "conv2_b": n(ks[7], (1,), 0.1),
        "bn2_gamma": 1.0 + n(ks[8], (1,), 0.1),
        "bn2_beta": n(ks[9], (1,), 0.1),
        "bn2_mean": jnp.zeros((1,), jnp.float32),
        "bn2_var": jnp.ones((1,), jnp.float32),
        "eps": 1e-5,
    }


def reference_forward(x_nchw, p):
    """Plain-JAX reference of the unfused forward pass (eval-mode BN)."""
    eps = p["eps"]
    N, C, H, W = x_nchw.shape
    x = x_nchw.reshape(N, C, H * W)
    w1 = p["conv1_w"].reshape(3, 3)                      # (Cout, Cin)
    h = jnp.einsum("oc,nct->not", w1, x) + p["conv1_b"][None, :, None]
    h = jnp.maximum(h, 0.0)
    s1 = p["bn1_gamma"] / jnp.sqrt(p["bn1_var"] + eps)
    t1 = p["bn1_beta"] - p["bn1_mean"] * s1
    h = h * s1[None, :, None] + t1[None, :, None]
    m = jnp.mean(h, axis=-1)                             # (N, 3)
    w2 = p["conv2_w"].reshape(1, 3)
    z = m @ w2.T + p["conv2_b"][None, :]                 # (N, 1)
    z = jnp.maximum(z, 0.0)
    s2 = p["bn2_gamma"] / jnp.sqrt(p["bn2_var"] + eps)
    t2 = p["bn2_beta"] - p["bn2_mean"] * s2
    z = z * s2 + t2
    return z.reshape(N, 1, 1, 1)


if __name__ == "__main__":
    key = jax.random.PRNGKey(0)
    k_x, k_p = jax.random.split(key)

    # Small NCHW input consistent with the module (3 input channels required).
    x = jax.random.normal(k_x, (2, 3, 16, 16), jnp.float32)
    params = make_params(k_p)

    out = jax.block_until_ready(linear_test_model(x, params))
    ref = reference_forward(x, params)

    assert out.shape == (2, 1, 1, 1)
    np.testing.assert_allclose(np.asarray(out), np.asarray(ref),
                               rtol=1e-4, atol=1e-4)
    print("KERNEL_OK")
</pallas_src>

<mosaic_0001>
module attributes {stable_mosaic.version = 11 : i64} {
  func.func @_linear_test_model_kernel(%arg0: i32, %arg1: i32, %arg2: memref<2x3x256xf32, #tpu.memory_space<vmem>>, %arg3: memref<3x3xf32, #tpu.memory_space<smem>>, %arg4: memref<3xf32, #tpu.memory_space<smem>>, %arg5: memref<3xf32, #tpu.memory_space<smem>>, %arg6: memref<3xf32, #tpu.memory_space<smem>>, %arg7: memref<1x2x1xf32, #tpu.memory_space<vmem>>, %arg8: memref<2x3xf32, #tpu.memory_space<vmem>>) attributes {dimension_semantics = [#tpu.dimension_semantics<parallel>, #tpu.dimension_semantics<arbitrary>], iteration_bounds = array<i64: 1, 1>, scalar_prefetch = 0 : i64, scratch_operands = 1 : i64, tpu.core_type = #tpu.core_type<tc>, window_params = [{transform_indices = @transform_0, window_bounds = array<i64: 2, 3, 256>}, {transform_indices = @transform_1, window_bounds = array<i64: 3, 3>}, {transform_indices = @transform_2, window_bounds = array<i64: 3>}, {transform_indices = @transform_3, window_bounds = array<i64: 3>}, {transform_indices = @transform_4, window_bounds = array<i64: 3>}, {transform_indices = @transform_5, window_bounds = array<i64: 1, 2, 1>}]} {
    %c0_i32 = arith.constant 0 : i32
    %0 = arith.cmpi eq, %arg1, %c0_i32 : i32
    %1 = arith.extui %0 : i1 to i32
    %c0_i32_0 = arith.constant 0 : i32
    %2 = arith.cmpi ne, %1, %c0_i32_0 : i32
    scf.if %2 {
      %cst_47 = arith.constant 0.000000e+00 : f32
      %75 = vector.broadcast %cst_47 : f32 to vector<2x3xf32>
      %c0_48 = arith.constant 0 : index
      %c0_49 = arith.constant 0 : index
      %76 = vector.load %arg8[%c0_48, %c0_49] : memref<2x3xf32, #tpu.memory_space<vmem>>, vector<2x3xf32>
      tpu.vector_store %arg8[%c0_48, %c0_49], %75 {strides = array<i32>} : memref<2x3xf32, #tpu.memory_space<vmem>>, vector<2x3xf32>,
    } else {
    }
    %c0 = arith.constant 0 : index
    %c0_1 = arith.constant 0 : index
    %c0_2 = arith.constant 0 : index
    %3 = vector.load %arg2[%c0, %c0_1, %c0_2] : memref<2x3x256xf32, #tpu.memory_space<vmem>>, vector<2x1x256xf32>
    %4 = vector.shape_cast %3 : vector<2x1x256xf32> to vector<2x256xf32>
    %c0_3 = arith.constant 0 : index
    %c1 = arith.constant 1 : index
    %c0_4 = arith.constant 0 : index
    %5 = vector.load %arg2[%c0_3, %c1, %c0_4] : memref<2x3x256xf32, #tpu.memory_space<vmem>>, vector<2x1x256xf32>
    %6 = vector.shape_cast %5 : vector<2x1x256xf32> to vector<2x256xf32>
    %c0_5 = arith.constant 0 : index
    %c2 = arith.constant 2 : index
    %c0_6 = arith.constant 0 : index
    %7 = vector.load %arg2[%c0_5, %c2, %c0_6] : memref<2x3x256xf32, #tpu.memory_space<vmem>>, vector<2x1x256xf32>
    %8 = vector.shape_cast %7 : vector<2x1x256xf32> to vector<2x256xf32>
    %c0_7 = arith.constant 0 : index
    %c0_8 = arith.constant 0 : index
    %9 = memref.load %arg3[%c0_7, %c0_8] : memref<3x3xf32, #tpu.memory_space<smem>>
    %10 = vector.broadcast %9 : f32 to vector<2x256xf32>
    %11 = arith.mulf %4, %10 : vector<2x256xf32>
    %c1_9 = arith.constant 1 : index
    %c0_10 = arith.constant 0 : index
    %12 = memref.load %arg3[%c1_9, %c0_10] : memref<3x3xf32, #tpu.memory_space<smem>>
    %13 = vector.broadcast %12 : f32 to vector<2x256xf32>
    %14 = arith.mulf %6, %13 : vector<2x256xf32>
    %15 = arith.addf %11, %14 : vector<2x256xf32>
    %c2_11 = arith.constant 2 : index
    %c0_12 = arith.constant 0 : index
    %16 = memref.load %arg3[%c2_11, %c0_12] : memref<3x3xf32, #tpu.memory_space<smem>>
    %17 = vector.broadcast %16 : f32 to vector<2x256xf32>
    %18 = arith.mulf %8, %17 : vector<2x256xf32>
    %19 = arith.addf %15, %18 : vector<2x256xf32>
    %c0_13 = arith.constant 0 : index
    %20 = memref.load %arg4[%c0_13] : memref<3xf32, #tpu.memory_space<smem>>
    %21 = vector.broadcast %20 : f32 to vector<2x256xf32>
    %22 = arith.addf %19, %21 : vector<2x256xf32>
    %cst = arith.constant 0.000000e+00 : f32
    %23 = vector.broadcast %cst : f32 to vector<2x256xf32>
    %24 = arith.maximumf %22, %23 : vector<2x256xf32>
    %c0_14 = arith.constant 0 : index
    %c0_15 = arith.constant 0 : index
    %25 = vector.load %arg8[%c0_14, %c0_15] : memref<2x3xf32, #tpu.memory_space<vmem>>, vector<2x1xf32>
    %cst_16 = arith.constant dense<0.000000e+00> : vector<2xf32>
    %26 = vector.multi_reduction <add>, %24, %cst_16 [1] : vector<2x256xf32> to vector<2xf32>
    %27 = vector.shape_cast %26 : vector<2xf32> to vector<2x1xf32>
    %28 = arith.addf %25, %27 : vector<2x1xf32>
    %c0_17 = arith.constant 0 : index
    %c0_18 = arith.constant 0 : index
    %29 = vector.load %arg8[%c0_17, %c0_18] : memref<2x3xf32, #tpu.memory_space<vmem>>, vector<2x1xf32>
    tpu.vector_store %arg8[%c0_17, %c0_18], %28 {strides = array<i32>} : memref<2x3xf32, #tpu.memory_space<vmem>>, vector<2x1xf32>,
    %c0_19 = arith.constant 0 : index
    %c1_20 = arith.constant 1 : index
    %30 = memref.load %arg3[%c0_19, %c1_20] : memref<3x3xf32, #tpu.memory_space<smem>>
    %31 = vector.broadcast %30 : f32 to vector<2x256xf32>
    %32 = arith.mulf %4, %31 : vector<2x256xf32>
    %c1_21 = arith.constant 1 : index
    %c1_22 = arith.constant 1 : index
    %33 = memref.load %arg3[%c1_21, %c1_22] : memref<3x3xf32, #tpu.memory_space<smem>>
    %34 = vector.broadcast %33 : f32 to vector<2x256xf32>
    %35 = arith.mulf %6, %34 : vector<2x256xf32>
    %36 = arith.addf %32, %35 : vector<2x256xf32>
    %c2_23 = arith.constant 2 : index
    %c1_24 = arith.constant 1 : index
    %37 = memref.load %arg3[%c2_23, %c1_24] : memref<3x3xf32, #tpu.memory_space<smem>>
    %38 = vector.broadcast %37 : f32 to vector<2x256xf32>
    %39 = arith.mulf %8, %38 : vector<2x256xf32>
    %40 = arith.addf %36, %39 : vector<2x256xf32>
    %c1_25 = arith.constant 1 : index
    %41 = memref.load %arg4[%c1_25] : memref<3xf32, #tpu.memory_space<smem>>
    %42 = vector.broadcast %41 : f32 to vector<2x256xf32>
    %43 = arith.addf %40, %42 : vector<2x256xf32>
    %cst_26 = arith.constant 0.000000e+00 : f32
    %44 = vector.broadcast %cst_26 : f32 to vector<2x256xf32>
    %45 = arith.maximumf %43, %44 : vector<2x256xf32>
    %c0_27 = arith.constant 0 : index
    %c1_28 = arith.constant 1 : index
    %46 = vector.load %arg8[%c0_27, %c1_28] : memref<2x3xf32, #tpu.memory_space<vmem>>, vector<2x1xf32>
    %cst_29 = arith.constant dense<0.000000e+00> : vector<2xf32>
    %47 = vector.multi_reduction <add>, %45, %cst_29 [1] : vector<2x256xf32> to vector<2xf32>
    %48 = vector.shape_cast %47 : vector<2xf32> to vector<2x1xf32>
    %49 = arith.addf %46, %48 : vector<2x1xf32>
    %c0_30 = arith.constant 0 : index
    %c1_31 = arith.constant 1 : index
    %50 = vector.load %arg8[%c0_30, %c1_31] : memref<2x3xf32, #tpu.memory_space<vmem>>, vector<2x1xf32>
    tpu.vector_store %arg8[%c0_30, %c1_31], %49 {strides = array<i32>} : memref<2x3xf32, #tpu.memory_space<vmem>>, vector<2x1xf32>,
    %c0_32 = arith.constant 0 : index
    %c2_33 = arith.constant 2 : index
    %51 = memref.load %arg3[%c0_32, %c2_33] : memref<3x3xf32, #tpu.memory_space<smem>>
    %52 = vector.broadcast %51 : f32 to vector<2x256xf32>
    %53 = arith.mulf %4, %52 : vector<2x256xf32>
    %c1_34 = arith.constant 1 : index
    %c2_35 = arith.constant 2 : index
    %54 = memref.load %arg3[%c1_34, %c2_35] : memref<3x3xf32, #tpu.memory_space<smem>>
    %55 = vector.broadcast %54 : f32 to vector<2x256xf32>
    %56 = arith.mulf %6, %55 : vector<2x256xf32>
    %57 = arith.addf %53, %56 : vector<2x256xf32>
    %c2_36 = arith.constant 2 : index
    %c2_37 = arith.constant 2 : index
    %58 = memref.load %arg3[%c2_36, %c2_37] : memref<3x3xf32, #tpu.memory_space<smem>>
    %59 = vector.broadcast %58 : f32 to vector<2x256xf32>
    %60 = arith.mulf %8, %59 : vector<2x256xf32>
    %61 = arith.addf %57, %60 : vector<2x256xf32>
    %c2_38 = arith.constant 2 : index
    %62 = memref.load %arg4[%c2_38] : memref<3xf32, #tpu.memory_space<smem>>
    %63 = vector.broadcast %62 : f32 to vector<2x256xf32>
    %64 = arith.addf %61, %63 : vector<2x256xf32>
    %cst_39 = arith.constant 0.000000e+00 : f32
    %65 = vector.broadcast %cst_39 : f32 to vector<2x256xf32>
    %66 = arith.maximumf %64, %65 : vector<2x256xf32>
    %c0_40 = arith.constant 0 : index
    %c2_41 = arith.constant 2 : index
    %67 = vector.load %arg8[%c0_40, %c2_41] : memref<2x3xf32, #tpu.memory_space<vmem>>, vector<2x1xf32>
    %cst_42 = arith.constant dense<0.000000e+00> : vector<2xf32>
    %68 = vector.multi_reduction <add>, %66, %cst_42 [1] : vector<2x256xf32> to vector<2xf32>
    %69 = vector.shape_cast %68 : vector<2xf32> to vector<2x1xf32>
    %70 = arith.addf %67, %69 : vector<2x1xf32>
    %c0_43 = arith.constant 0 : index
    %c2_44 = arith.constant 2 : index
    %71 = vector.load %arg8[%c0_43, %c2_44] : memref<2x3xf32, #tpu.memory_space<vmem>>, vector<2x1xf32>
    tpu.vector_store %arg8[%c0_43, %c2_44], %70 {strides = array<i32>} : memref<2x3xf32, #tpu.memory_space<vmem>>, vector<2x1xf32>,
    %c0_i32_45 = arith.constant 0 : i32
    %72 = arith.cmpi eq, %arg1, %c0_i32_45 : i32
    %73 = arith.extui %72 : i1 to i32
    %c0_i32_46 = arith.constant 0 : i32
    %74 = arith.cmpi ne, %73, %c0_i32_46 : i32
    scf.if %74 {
      %c0_47 = arith.constant 0 : index
      %c0_48 = arith.constant 0 : index
      %75 = vector.load %arg8[%c0_47, %c0_48] : memref<2x3xf32, #tpu.memory_space<vmem>>, vector<2x3xf32>
      %76 = vector.extract_strided_slice %75 {offsets = [0, 0], sizes = [2, 1], strides = [1, 1]} : vector<2x3xf32> to vector<2x1xf32>
      %c0_49 = arith.constant 0 : index
      %77 = memref.load %arg5[%c0_49] : memref<3xf32, #tpu.memory_space<smem>>
      %78 = vector.broadcast %77 : f32 to vector<2x1xf32>
      %79 = arith.mulf %76, %78 : vector<2x1xf32>
      %80 = vector.extract_strided_slice %75 {offsets = [0, 1], sizes = [2, 1], strides = [1, 1]} : vector<2x3xf32> to vector<2x1xf32>
      %c1_50 = arith.constant 1 : index
      %81 = memref.load %arg5[%c1_50] : memref<3xf32, #tpu.memory_space<smem>>
      %82 = vector.broadcast %81 : f32 to vector<2x1xf32>
      %83 = arith.mulf %80, %82 : vector<2x1xf32>
      %84 = arith.addf %79, %83 : vector<2x1xf32>
      %85 = vector.extract_strided_slice %75 {offsets = [0, 2], sizes = [2, 1], strides = [1, 1]} : vector<2x3xf32> to vector<2x1xf32>
      %c2_51 = arith.constant 2 : index
      %86 = memref.load %arg5[%c2_51] : memref<3xf32, #tpu.memory_space<smem>>
      %87 = vector.broadcast %86 : f32 to vector<2x1xf32>
      %88 = arith.mulf %85, %87 : vector<2x1xf32>
      %89 = arith.addf %84, %88 : vector<2x1xf32>
      %c0_52 = arith.constant 0 : index
      %90 = memref.load %arg6[%c0_52] : memref<3xf32, #tpu.memory_space<smem>>
      %91 = vector.broadcast %90 : f32 to vector<2x1xf32>
      %92 = arith.addf %89, %91 : vector<2x1xf32>
      %cst_53 = arith.constant 0.000000e+00 : f32
      %93 = vector.broadcast %cst_53 : f32 to vector<2x1xf32>
      %94 = arith.maximumf %92, %93 : vector<2x1xf32>
      %c1_54 = arith.constant 1 : index
      %95 = memref.load %arg6[%c1_54] : memref<3xf32, #tpu.memory_space<smem>>
      %96 = vector.broadcast %95 : f32 to vector<2x1xf32>
      %97 = arith.mulf %94, %96 : vector<2x1xf32>
      %c2_55 = arith.constant 2 : index
      %98 = memref.load %arg6[%c2_55] : memref<3xf32, #tpu.memory_space<smem>>
      %99 = vector.broadcast %98 : f32 to vector<2x1xf32>
      %100 = arith.addf %97, %99 : vector<2x1xf32>
      %101 = vector.shape_cast %100 : vector<2x1xf32> to vector<1x2x1xf32>
      %c0_56 = arith.constant 0 : index
      %c0_57 = arith.constant 0 : index
      %c0_58 = arith.constant 0 : index
      %102 = vector.load %arg7[%c0_56, %c0_57, %c0_58] : memref<1x2x1xf32, #tpu.memory_space<vmem>>, vector<1x2x1xf32>
      tpu.vector_store %arg7[%c0_56, %c0_57, %c0_58], %101 {strides = array<i32>} : memref<1x2x1xf32, #tpu.memory_space<vmem>>, vector<1x2x1xf32>,
    } else {
    }
    return
  }
  func.func @transform_0(%arg0: i32, %arg1: i32) -> (i32, i32, i32) {
    %c0_i32 = arith.constant 0 : i32
    %c0_i32_0 = arith.constant 0 : i32
    return %arg0, %c0_i32, %arg1 : i32, i32, i32
  }
  func.func @transform_1(%arg0: i32, %arg1: i32) -> (i32, i32) {
    %c0_i32 = arith.constant 0 : i32
    %c0_i32_0 = arith.constant 0 : i32
    %c0_i32_1 = arith.constant 0 : i32
    return %c0_i32, %c0_i32_0 : i32, i32
  }
  func.func @transform_2(%arg0: i32, %arg1: i32) -> i32 {
    %c0_i32 = arith.constant 0 : i32
    %c0_i32_0 = arith.constant 0 : i32
    return %c0_i32 : i32
  }
  func.func @transform_3(%arg0: i32, %arg1: i32) -> i32 {
    %c0_i32 = arith.constant 0 : i32
    %c0_i32_0 = arith.constant 0 : i32
    return %c0_i32 : i32
  }
  func.func @transform_4(%arg0: i32, %arg1: i32) -> i32 {
    %c0_i32 = arith.constant 0 : i32
    %c0_i32_0 = arith.constant 0 : i32
    return %c0_i32 : i32
  }
  func.func @transform_5(%arg0: i32, %arg1: i32) -> (i32, i32, i32) {
    %c0_i32 = arith.constant 0 : i32
    %c0_i32_0 = arith.constant 0 : i32
    %c0_i32_1 = arith.constant 0 : i32
    return %arg0, %c0_i32, %c0_i32_0 : i32, i32, i32
  }
}

</mosaic_0001>

<bundles_post_ra>
// kernel: tpu_custom_call.1
= control target key start
LH: loop header
LB: loop body
LE: loop exit
PB: predicated region body
PF: predicated region fallthrough
CT: control target
= control target key end

     0   :  { %10 = vsyncpa [#allocation4], 0  ;;  %s417_s0 = inlined_call_operand.vmem [shape: f32[2,3,256], index: 0, kind: input, shape index: {}]   ;;  %s418_s1 = inlined_call_operand.vmem [shape: f32[3,3], index: 1, kind: input, shape index: {}]   ;;  %s419_s2 = inlined_call_operand.vmem [shape: f32[3], index: 2, kind: input, shape index: {}]   ;;  %s420_s3 = inlined_call_operand.vmem [shape: f32[3], index: 3, kind: input, shape index: {}]   ;;  %s421_s4 = inlined_call_operand.vmem [shape: f32[3], index: 4, kind: input, shape index: {}]   ;;  %s422_s5 = inlined_call_operand.vmem [shape: f32[1,2,1], index: 5, kind: output, shape index: {}]  }
   0x1   :  { %11 = vsyncpa [#allocation6], 0  ;;  %s29_s20 = sshll.u32 %s419_s2, 4  ;;  %s30_s20 = int_to_ptr.vmem [resolvable:$true] %s29_s20 }
   0x2   :  { %12 = vsyncpa [#allocation9], 0  ;;  %s20_s23 = sshll.u32 %s418_s1, 4  ;;  %s327_s24 = smov [#allocation5]   ;;  %s21_s23 = int_to_ptr.vmem [resolvable:$true] %s20_s23 }
   0x3   :  { %32 = dma.vmem_to_smem %s30_s20, 16, %s327_s24, [#allocation6]  }
   0x4   :  { %s328_s25 = smov [#allocation3]   ;;  %s38_s28 = sshll.u32 %s420_s3, 4  ;;  %s39_s28 = int_to_ptr.vmem [resolvable:$true] %s38_s28 }
   0x5   :  { %23 = dma.vmem_to_smem %s21_s23, 64, %s328_s25, [#allocation4]  }
   0x6   :  { %s47_s2 = sshll.u32 %s421_s4, 4  ;;  %s329_s6 = smov [#allocation7]   ;;  %s48_s2 = int_to_ptr.vmem [resolvable:$true] %s47_s2 }
   0x7   :  { %41 = dma.vmem_to_smem %s39_s28, 16, %s329_s6, [#allocation6]  }
   0x8   :  { %s330_s7 = smov [#allocation8]  }
   0x9   :  { %50 = dma.vmem_to_smem %s48_s2, 16, %s330_s7, [#allocation9]  }
   0xa   :  { %321 = dma.done.wait [#allocation4], 64  }
   0xb   :  { %322 = vsyncadd [#allocation4], 4294967232 }
   0xc   :  { %323 = dma.done.wait [#allocation6], 32  }
   0xd   :  { %324 = vsyncadd [#allocation6], 4294967264 }
   0xe   :  { %325 = dma.done.wait [#allocation9], 16  }
   0xf   :  { %326 = vsyncadd [#allocation9], 4294967280 }
  0x10   :  { %67 = sfence }
  0x11   :  { %s85_s1 = sld [smem:[#allocation3]]  ;;  %v74_v0 = vld [vmem:[%s417_s0] ss:$4 sm:$0x3]  ;;  %vm117_vm0 = vcmask 1041408   ;;  %vm72_vm1 = vcmask 17408  }
  0x12   :  { %s252_s8 = sld [smem:[#allocation3 + $0x80]]  ;;  %v247_v1 = vld [vmem:[%s417_s0 + $0x8] ss:$4 sm:$0x3]  ;;  %vm124_vm2 = vcmask 1024   ;;  %vm164_vm3 = vcmask 9224  }
  0x13   :  { %s253_s11 = sld [smem:[#allocation3 + $0x100]]  ;;  %v248_v2 = vld [vmem:[%s417_s0 + $0x1] ss:$4 sm:$0x3]  ;;  %vm204_vm4 = vcmask 17424   ;;  %s332_s30 = smov 126  }
  0x14   :  { %s385_s14 = sld [smem:[#allocation5]]  ;;  %v249_v3 = vld [vmem:[%s417_s0 + $0x9] ss:$4 sm:$0x3]  ;;  %s333_s2 = smov 127  }
  0x15   :  { %s254_s17 = sld [smem:[#allocation3 + $0x1]]  ;;  %v250_v4 = vld [vmem:[%s417_s0 + $0x2] ss:$4 sm:$0x3] }
  0x16   :  { %s255_s20 = sld [smem:[#allocation3 + $0x81]]  ;;  %v251_v5 = vld [vmem:[%s417_s0 + $0xa] ss:$4 sm:$0x3] }
  0x17   :  { %v86_v6 = vstv %s85_s1  ;;  %s396_s23 = sld [smem:[#allocation3 + $0x101]] }
  0x18   :  { %v87_v7 = vmul.f32 %v86_v6, %v74_v0  ;;  %v88_v8 = vmul.f32 %v247_v1, %v86_v6  ;;  %v90_v9 = vstv %s252_s8  ;;  %s398_s24 = sld [smem:[#allocation5 + $0x1]] }
  0x19   :  { %v91_v10 = vmul.f32 %v248_v2, %v90_v9  ;;  %v92_v11 = vmul.f32 %v249_v3, %v90_v9  ;;  %v96_v12 = vstv %s253_s11  ;;  %s258_s25 = sld [smem:[#allocation3 + $0x2]] }
  0x1a   :  { %v97_v13 = vmul.f32 %v250_v4, %v96_v12  ;;  %v98_v14 = vmul.f32 %v251_v5, %v96_v12  ;;  %s259_s26 = sld [smem:[#allocation3 + $0x82]]  ;;  %v102_v18 = vstv %s385_s14 }
  0x1b   :  { %v93_v15 = vadd.f32 %v91_v10, %v87_v7  ;;  %v94_v16 = vadd.f32 %v92_v11, %v88_v8  ;;  %v127_v17 = vstv %s254_s17  ;;  %s400_s0 = sld [smem:[#allocation3 + $0x102]]  ;;  %v331_v11 = vmov 0.0  }
  0x1c   :  { %v128_v19 = vmul.f32 %v127_v17, %v74_v0  ;;  %v129_v20 = vmul.f32 %v247_v1, %v127_v17  ;;  %v131_v21 = vstv %s255_s20  ;;  %s261_s27 = sld [smem:[#allocation5 + $0x2]]  ;;  %73 = vst.msk [vmem:[#allocation2] sm:$0x3] %vm72_vm1, %v331_v11 }
  0x1d   :  { %v99_v22 = vadd.f32 %v97_v13, %v93_v15  ;;  %v100_v23 = vadd.f32 %v98_v14, %v94_v16  ;;  %v132_v24 = vmul.f32 %v248_v2, %v131_v21  ;;  %v133_v25 = vmul.f32 %v249_v3, %v131_v21  ;;  %s263_s28 = sld [smem:[#allocation7 + $0x2]] }
  0x1e   :  { %v137_v26 = vstv %s396_s23  ;;  %v143_v27 = vstv %s398_s24  ;;  %s262_s29 = sld [smem:[#allocation7 + $0x1]] }
  0x1f   :  { %v103_v28 = vadd.f32 %v102_v18, %v99_v22  ;;  %v104_v29 = vadd.f32 %v102_v18, %v100_v23  ;;  %v134_v30 = vadd.f32 %v132_v24, %v128_v19  ;;  %v135_v31 = vadd.f32 %v133_v25, %v129_v20  ;;  %s210_s6 = sld [smem:[#allocation7]] }
  0x20   :  { %v138_v32 = vmul.f32 %v250_v4, %v137_v26  ;;  %v139_v33 = vmul.f32 %v251_v5, %v137_v26  ;;  %v167_v34 = vstv %s258_s25  ;;  %v171_v35 = vstv %s259_s26  ;;  %s229_s7 = sld [smem:[#allocation8]] }
  0x21   :  { %v105_v36 = vmax.f32 %v103_v28, 0.0  ;;  %v106_v37 = vmax.f32 %v104_v29, 0.0  ;;  %v168_v38 = vmul.f32 %v167_v34, %v74_v0  ;;  %v169_v39 = vmul.f32 %v247_v1, %v167_v34  ;;  %s264_s1 = sld [smem:[#allocation8 + $0x1]] }
  0x22   :  { %v140_v40 = vadd.f32 %v138_v32, %v134_v30  ;;  %v141_v41 = vadd.f32 %v139_v33, %v135_v31  ;;  %v172_v42 = vmul.f32 %v248_v2, %v171_v35  ;;  %v173_v43 = vmul.f32 %v249_v3, %v171_v35  ;;  %s265_s8 = sld [smem:[#allocation8 + $0x2]] }
  0x23   :  { %110 = vst [vmem:[#allocation1] ss:$9 sm:$0xff] %v105_v36  ;;  %v177_v44 = vstv %s400_s0  ;;  %v183_v55 = vstv %s261_s27  ;;  %v107_v12 = vld [vmem:[#allocation2] sm:$0x3]  ;;  %v222_v21 = vstv %s263_s28 }
  0x24   :  { %112 = vst [vmem:[#allocation1 + $0x1] ss:$9 sm:$0xff] %v106_v37  ;;  %v144_v45 = vadd.f32 %v143_v27, %v140_v40  ;;  %v145_v46 = vadd.f32 %v143_v27, %v141_v41  ;;  %v174_v47 = vadd.f32 %v172_v42, %v168_v38  ;;  %v178_v48 = vmul.f32 %v250_v4, %v177_v44 }
  0x25   :  { %v175_v49 = vadd.f32 %v173_v43, %v169_v39  ;;  %v179_v50 = vmul.f32 %v251_v5, %v177_v44  ;;  %v214_v22 = vstv %s262_s29  ;;  %v211_v26 = vstv %s210_s6 }
  0x26   :  { %v146_v51 = vmax.f32 %v144_v45, 0.0  ;;  %v147_v52 = vmax.f32 %v145_v46, 0.0  ;;  %v180_v53 = vadd.f32 %v178_v48, %v174_v47  ;;  %v230_v31 = vstv %s229_s7 }
  0x27   :  { %v181_v54 = vadd.f32 %v179_v50, %v175_v49  ;;  %v234_v34 = vstv %s264_s1 }
  0x28   :  { %v184_v61 = vadd.f32 %v183_v55, %v180_v53  ;;  %v237_v36 = vstv %s265_s8 }
  0x29   :  { %v185_v62 = vadd.f32 %v183_v55, %v181_v54 }
  0x2a   :  { %v186_v63 = vmax.f32 %v184_v61, 0.0 }
  0x2b   :  { %v113_v56 = vld [vmem:[#allocation1] sm:$0xff]  ;;  %v114_v57 = vld [vmem:[#allocation1 + $0x9] sm:$0xff]  ;;  %v187_v0 = vmax.f32 %v185_v62, 0.0 }
  0x2c   :  { %v118_v58 = vsel %vm117_vm0, %v113_v56, 0.0  ;;  %v119_v59 = vsel %vm117_vm0, %v114_v57, 0.0  ;;  %151 = vst [vmem:[#allocation1] ss:$9 sm:$0xff] %v146_v51 }
  0x2d   :  { %v120_v60 = vadd.f32 %v119_v59, %v118_v58  ;;  %153 = vst [vmem:[#allocation1 + $0x1] ss:$9 sm:$0xff] %v147_v52 }
  0x2f   :  { %121 = vadd.xlane.f32.xlu0 %v120_v60 }
  0x34   :  { %v154_v1 = vld [vmem:[#allocation1] sm:$0xff]  ;;  %v155_v2 = vld [vmem:[#allocation1 + $0x9] sm:$0xff] }
  0x35   :  { %v158_v3 = vsel %vm117_vm0, %v154_v1, 0.0  ;;  %v159_v4 = vsel %vm117_vm0, %v155_v2, 0.0  ;;  %191 = vst [vmem:[#allocation1] ss:$9 sm:$0xff] %v186_v63 }
  0x36   :  { %v160_v5 = vadd.f32 %v159_v4, %v158_v3  ;;  %193 = vst [vmem:[#allocation1 + $0x1] ss:$9 sm:$0xff] %v187_v0 }
  0x38   :  { %161 = vadd.xlane.f32.xlu0 %v160_v5 }
  0x3d   :  { %v194_v6 = vld [vmem:[#allocation1] sm:$0xff]  ;;  %v195_v7 = vld [vmem:[#allocation1 + $0x9] sm:$0xff] }
  0x3e   :  { %v198_v8 = vsel %vm117_vm0, %v194_v6, 0.0  ;;  %v199_v9 = vsel %vm117_vm0, %v195_v7, 0.0 }
  0x3f   :  { %v200_v10 = vadd.f32 %v199_v9, %v198_v8 }
  0x41   :  { %201 = vadd.xlane.f32.xlu1 %v200_v10 }
  0xa2   :  { %v122_v13 = vpop.xlane.xlu0 %121 }
  0xa3   :  { %v123_v14 = vadd.f32 %v122_v13, %v107_v12 }
  0xa5   :  { %125 = vst.msk [vmem:[#allocation2] sm:$0x3] %vm124_vm2, %v123_v14 }
  0xab   :  { %v162_v15 = vpop.xlane.xlu0 %161 }
  0xac   :  { %v148_v16 = vld [vmem:[#allocation2] sm:$0x3] }
  0xad   :  { %v163_v17 = vadd.f32 %v162_v15, %v148_v16 }
  0xaf   :  { %165 = vst.msk [vmem:[#allocation2] sm:$0x3] %vm164_vm3, %v163_v17 }
  0xb4   :  { %v202_v18 = vpop.xlane.xlu1 %201 }
  0xb6   :  { %v188_v19 = vld [vmem:[#allocation2] sm:$0x3] }
  0xb7   :  { %v203_v20 = vadd.f32 %v202_v18, %v188_v19 }
  0xb9   :  { %205 = vst.msk [vmem:[#allocation2] sm:$0x3] %vm204_vm4, %v203_v20 }
  0xc0   :  { %v209_v23 = vld [vmem:[#allocation2] sm:$0x3] }
  0xc1   :  { %v223_v24 = vmul.f32 %v222_v21, %v209_v23  ;;  %v215_v25 = vmul.f32 %v214_v22, %v209_v23  ;;  %v212_v27 = vmul.f32 %v211_v26, %v209_v23 }
  0xc3   :  { %225 = vrot.lane.b32.xlu2 %v223_v24, %s332_s30  ;;  %217 = vrot.lane.b32.xlu1 %v215_v25, %s333_s2 }
 0x11d   :  { %v226_v30 = vpop.permute.xlu2 %225 }
 0x135   :  { %v218_v28 = vpop.permute.xlu1 %217 }
 0x136   :  { %v220_v29 = vadd.f32 %v218_v28, %v212_v27 }
 0x138   :  { %v228_v32 = vadd.f32 %v226_v30, %v220_v29 }
 0x13a   :  { %v231_v33 = vadd.f32 %v230_v31, %v228_v32 }
 0x13c   :  { %v232_v35 = vmax.f32 %v231_v33, 0.0 }
 0x13e   :  { %v235_v37 = vmul.f32 %v234_v34, %v232_v35 }
 0x140   :  { %v238_v38 = vadd.f32 %v237_v36, %v235_v37 }
 0x142   :  { %239 = vst.msk [vmem:[%s422_s5] sm:$0x3] %vm124_vm2, %v238_v38 }
 0x143   :  { %244 = vsyncpa [#allocation4], 1 }
 0x144   :  { %245 = vsyncpa [#allocation6], 1 }
 0x145   :  { %246 = vsyncpa [#allocation9], 1 }

</bundles_post_ra>
